<compile_context>
chip_gen: v7x
topology: tpu7x:2x2x1
jax: 0.10.0
libtpu: 0.0.40
codegen_flags: <defaults>
</compile_context>

<pallas_src>
import jax
import jax.numpy as jnp
from jax.experimental import pallas as pl
from jax.experimental.pallas import tpu as pltpu

HIDDEN_PAD = 128       # 50 -> 128 lanes
LOGIT_PAD = 128        # internal logits width (lane-dense matmul output)
OUT_STORE = 16         # stored output columns (>= 10, 8x fewer write bytes than 128)
NUM_CLASSES = 10
NEG_BIG = -1e30        # padded-logit bias: exp underflows to exactly 0
TB_MAX = 1024          # max batch tile
SPLIT_THRESHOLD = 512  # batches >= this use >= 2 tiles (v7x has 2 TensorCores)


def _cdiv(a, b):
    return (a + b - 1) // b


def _round_up(x, m):
    return ((x + m - 1) // m) * m


def mlp_kernel(x_ref, w1_ref, b1_ref, w2_ref, b2_ref, w3_ref, b3_ref, o_ref):
    # x tile arrives f32; cast to bf16 in-kernel for the MXU (f32 accumulate).
    x = x_ref[...].astype(jnp.bfloat16)

    h1 = jnp.dot(x, w1_ref[...], preferred_element_type=jnp.float32) + b1_ref[...]
    h1 = jnp.clip(h1, -1.0, 1.0)                       # F.hardtanh

    h2 = jnp.dot(h1.astype(jnp.bfloat16), w2_ref[...],
                 preferred_element_type=jnp.float32) + b2_ref[...]
    h2 = jnp.clip(h2, -1.0, 1.0)                       # F.hardtanh

    logits = jnp.dot(h2.astype(jnp.bfloat16), w3_ref[...],
                     preferred_element_type=jnp.float32) + b3_ref[...]
    # Columns >= NUM_CLASSES carry bias NEG_BIG -> exp underflows to exactly 0,
    # so the softmax over the 10 real classes is unaffected.

    m = jnp.max(logits, axis=1, keepdims=True)
    e = jnp.exp(logits - m)
    denom = jnp.sum(e, axis=1, keepdims=True)
    # Exact divide (not approx reciprocal) so rows sum to 1 to f32 precision;
    # EUP is nowhere near the bottleneck here.
    probs = e[:, :OUT_STORE] / denom                   # narrow, low-byte store
    o_ref[...] = probs.astype(o_ref.dtype)


def prepare_params(params):
    """Pad raw f32 params ([in,out] weights, [out] biases) to lane-dense,
    bf16 weights / f32 biases laid out for the kernel."""
    w1, b1, w2, b2, w3, b3 = params
    d_in, h = w1.shape
    _, c = w3.shape

    w1p = jnp.zeros((d_in, HIDDEN_PAD), jnp.float32).at[:, :h].set(w1)
    b1p = jnp.zeros((1, HIDDEN_PAD), jnp.float32).at[0, :h].set(b1)
    w2p = jnp.zeros((HIDDEN_PAD, HIDDEN_PAD), jnp.float32).at[:h, :h].set(w2)
    b2p = jnp.zeros((1, HIDDEN_PAD), jnp.float32).at[0, :h].set(b2)
    w3p = jnp.zeros((HIDDEN_PAD, LOGIT_PAD), jnp.float32).at[:h, :c].set(w3)
    b3p = jnp.full((1, LOGIT_PAD), NEG_BIG, jnp.float32).at[0, :c].set(b3)

    return (w1p.astype(jnp.bfloat16), b1p,
            w2p.astype(jnp.bfloat16), b2p,
            w3p.astype(jnp.bfloat16), b3p)


def model5_forward(x, prepared_params):
    w1, b1, w2, b2, w3, b3 = prepared_params
    B, D = x.shape

    # Tile selection: as few tiles as possible (<= TB_MAX rows each); batch
    # pads by at most 15 rows per tile.  Large batches get >= 2 tiles so the
    # "parallel" grid axis can shard across both TensorCores on v7x.
    n_tiles = _cdiv(B, TB_MAX)
    if n_tiles == 1 and B >= SPLIT_THRESHOLD:
        n_tiles = 2
    tb = _round_up(_cdiv(B, n_tiles), 16)   # bf16 sublane packing
    b_pad = n_tiles * tb

    xp = x if b_pad == B else jnp.pad(x, ((0, b_pad - B), (0, 0)))

    const2 = lambda i: (0, 0)  # weights/biases resident across all grid steps

    out_padded = pl.pallas_call(
        mlp_kernel,
        out_shape=jax.ShapeDtypeStruct((b_pad, OUT_STORE), jnp.float32),
        grid=(n_tiles,),
        in_specs=[
            pl.BlockSpec((tb, D), lambda i: (i, 0)),
            pl.BlockSpec(w1.shape, const2),
            pl.BlockSpec(b1.shape, const2),
            pl.BlockSpec(w2.shape, const2),
            pl.BlockSpec(b2.shape, const2),
            pl.BlockSpec(w3.shape, const2),
            pl.BlockSpec(b3.shape, const2),
        ],
        out_specs=pl.BlockSpec((tb, OUT_STORE), lambda i: (i, 0)),
        compiler_params=pltpu.CompilerParams(
            dimension_semantics=("parallel",)),
    )(xp, w1, b1, w2, b2, w3, b3)

    return out_padded[:B, :NUM_CLASSES]


def init_params(key, input_dim):
    # PyTorch nn.Linear default init: U(-1/sqrt(fan_in), 1/sqrt(fan_in)).
    # Weights stored already transposed as [in, out]; biases as [out].
    dims = [(input_dim, 50), (50, 50), (50, NUM_CLASSES)]
    params = []
    for fan_in, fan_out in dims:
        key, kw, kb = jax.random.split(key, 3)
        bound = 1.0 / jnp.sqrt(fan_in)
        w = jax.random.uniform(kw, (fan_in, fan_out), jnp.float32, -bound, bound)
        b = jax.random.uniform(kb, (fan_out,), jnp.float32, -bound, bound)
        params.extend([w, b])
    return tuple(params)


def reference_forward_f32(x, params):
    w1, b1, w2, b2, w3, b3 = params
    h1 = jnp.clip(x @ w1 + b1, -1.0, 1.0)
    h2 = jnp.clip(h1 @ w2 + b2, -1.0, 1.0)
    return jax.nn.softmax(h2 @ w3 + b3, axis=1)


def reference_forward_bf16(x, params):
    # Same bf16-operand / f32-accumulate quantization the kernel uses.
    w1, b1, w2, b2, w3, b3 = params
    bf = jnp.bfloat16
    h1 = jnp.dot(x.astype(bf), w1.astype(bf),
                 preferred_element_type=jnp.float32) + b1
    h1 = jnp.clip(h1, -1.0, 1.0)
    h2 = jnp.dot(h1.astype(bf), w2.astype(bf),
                 preferred_element_type=jnp.float32) + b2
    h2 = jnp.clip(h2, -1.0, 1.0)
    logits = jnp.dot(h2.astype(bf), w3.astype(bf),
                     preferred_element_type=jnp.float32) + b3
    return jax.nn.softmax(logits, axis=1)


if __name__ == "__main__":
    key = jax.random.PRNGKey(0)
    input_dim = 64  # sklearn digits: 8x8 flattened

    params = init_params(key, input_dim)
    prepared = prepare_params(params)

    # --- small batch (single grid step, 8 -> 16 row pad) ---
    key, kx = jax.random.split(key)
    x_small = jax.random.normal(kx, (8, input_dim), dtype=jnp.float32)

    out = jax.block_until_ready(model5_forward(x_small, prepared))
    assert out.shape == (8, NUM_CLASSES)
    assert jnp.allclose(out, reference_forward_bf16(x_small, params), atol=2e-3)
    assert jnp.allclose(out, reference_forward_f32(x_small, params), atol=3e-2)
    assert jnp.allclose(jnp.sum(out, axis=1), jnp.ones((8,)), atol=2e-3)

    # --- larger batch: single 304-row tile (only 4 padded rows) ---
    key, kx = jax.random.split(key)
    x_big = jax.random.normal(kx, (300, input_dim), dtype=jnp.float32)

    out_big = jax.block_until_ready(model5_forward(x_big, prepared))
    assert out_big.shape == (300, NUM_CLASSES)
    assert jnp.allclose(out_big, reference_forward_bf16(x_big, params), atol=2e-3)
    assert jnp.allclose(jnp.sum(out_big, axis=1), jnp.ones((300,)), atol=2e-3)

    print("KERNEL_OK")
</pallas_src>

<mosaic_0001>
module attributes {stable_mosaic.version = 11 : i64} {
  func.func @mlp_kernel(%arg0: i32, %arg1: memref<16x64xf32, #tpu.memory_space<vmem>>, %arg2: memref<64x128xbf16, #tpu.memory_space<vmem>>, %arg3: memref<1x128xf32, #tpu.memory_space<vmem>>, %arg4: memref<128x128xbf16, #tpu.memory_space<vmem>>, %arg5: memref<1x128xf32, #tpu.memory_space<vmem>>, %arg6: memref<128x128xbf16, #tpu.memory_space<vmem>>, %arg7: memref<1x128xf32, #tpu.memory_space<vmem>>, %arg8: memref<16x16xf32, #tpu.memory_space<vmem>>) attributes {dimension_semantics = [#tpu.dimension_semantics<parallel>], iteration_bounds = array<i64: 1>, scalar_prefetch = 0 : i64, scratch_operands = 0 : i64, tpu.core_type = #tpu.core_type<tc>, window_params = [{transform_indices = @transform_0, window_bounds = array<i64: 16, 64>}, {pipeline_mode = #tpu.pipeline_mode<synchronous>, transform_indices = @transform_1, window_bounds = array<i64: 64, 128>}, {pipeline_mode = #tpu.pipeline_mode<synchronous>, transform_indices = @transform_2, window_bounds = array<i64: 1, 128>}, {pipeline_mode = #tpu.pipeline_mode<synchronous>, transform_indices = @transform_3, window_bounds = array<i64: 128, 128>}, {pipeline_mode = #tpu.pipeline_mode<synchronous>, transform_indices = @transform_4, window_bounds = array<i64: 1, 128>}, {pipeline_mode = #tpu.pipeline_mode<synchronous>, transform_indices = @transform_5, window_bounds = array<i64: 128, 128>}, {pipeline_mode = #tpu.pipeline_mode<synchronous>, transform_indices = @transform_6, window_bounds = array<i64: 1, 128>}, {transform_indices = @transform_7, window_bounds = array<i64: 16, 16>}]} {
    %c0 = arith.constant 0 : index
    %c0_0 = arith.constant 0 : index
    %0 = vector.load %arg1[%c0, %c0_0] : memref<16x64xf32, #tpu.memory_space<vmem>>, vector<16x64xf32>
    %1 = arith.truncf %0 : vector<16x64xf32> to vector<16x64xbf16>
    %c0_1 = arith.constant 0 : index
    %c0_2 = arith.constant 0 : index
    %2 = vector.load %arg2[%c0_1, %c0_2] : memref<64x128xbf16, #tpu.memory_space<vmem>>, vector<64x128xbf16>
    %cst = arith.constant dense<0.000000e+00> : vector<16x128xf32>
    %3 = tpu.matmul %1, %2, %cst {dimension_numbers = #tpu.dot_dimension_numbers<[1], [0], [0], [1], [0, 0, 1, 1], [], []>} : vector<16x64xbf16>, vector<64x128xbf16>, vector<16x128xf32> -> vector<16x128xf32>
    %c0_3 = arith.constant 0 : index
    %c0_4 = arith.constant 0 : index
    %4 = vector.load %arg3[%c0_3, %c0_4] : memref<1x128xf32, #tpu.memory_space<vmem>>, vector<1x128xf32>
    %5 = vector.broadcast %4 : vector<1x128xf32> to vector<16x128xf32>
    %6 = arith.addf %3, %5 : vector<16x128xf32>
    %cst_5 = arith.constant -1.000000e+00 : f32
    %cst_6 = arith.constant 1.000000e+00 : f32
    %7 = vector.broadcast %cst_5 : f32 to vector<16x128xf32>
    %8 = arith.maximumf %7, %6 : vector<16x128xf32>
    %9 = vector.broadcast %cst_6 : f32 to vector<16x128xf32>
    %10 = arith.minimumf %9, %8 : vector<16x128xf32>
    %11 = arith.truncf %10 : vector<16x128xf32> to vector<16x128xbf16>
    %c0_7 = arith.constant 0 : index
    %c0_8 = arith.constant 0 : index
    %12 = vector.load %arg4[%c0_7, %c0_8] : memref<128x128xbf16, #tpu.memory_space<vmem>>, vector<128x128xbf16>
    %cst_9 = arith.constant dense<0.000000e+00> : vector<16x128xf32>
    %13 = tpu.matmul %11, %12, %cst_9 {dimension_numbers = #tpu.dot_dimension_numbers<[1], [0], [0], [1], [0, 0, 1, 1], [], []>} : vector<16x128xbf16>, vector<128x128xbf16>, vector<16x128xf32> -> vector<16x128xf32>
    %c0_10 = arith.constant 0 : index
    %c0_11 = arith.constant 0 : index
    %14 = vector.load %arg5[%c0_10, %c0_11] : memref<1x128xf32, #tpu.memory_space<vmem>>, vector<1x128xf32>
    %15 = vector.broadcast %14 : vector<1x128xf32> to vector<16x128xf32>
    %16 = arith.addf %13, %15 : vector<16x128xf32>
    %cst_12 = arith.constant -1.000000e+00 : f32
    %cst_13 = arith.constant 1.000000e+00 : f32
    %17 = vector.broadcast %cst_12 : f32 to vector<16x128xf32>
    %18 = arith.maximumf %17, %16 : vector<16x128xf32>
    %19 = vector.broadcast %cst_13 : f32 to vector<16x128xf32>
    %20 = arith.minimumf %19, %18 : vector<16x128xf32>
    %21 = arith.truncf %20 : vector<16x128xf32> to vector<16x128xbf16>
    %c0_14 = arith.constant 0 : index
    %c0_15 = arith.constant 0 : index
    %22 = vector.load %arg6[%c0_14, %c0_15] : memref<128x128xbf16, #tpu.memory_space<vmem>>, vector<128x128xbf16>
    %cst_16 = arith.constant dense<0.000000e+00> : vector<16x128xf32>
    %23 = tpu.matmul %21, %22, %cst_16 {dimension_numbers = #tpu.dot_dimension_numbers<[1], [0], [0], [1], [0, 0, 1, 1], [], []>} : vector<16x128xbf16>, vector<128x128xbf16>, vector<16x128xf32> -> vector<16x128xf32>
    %c0_17 = arith.constant 0 : index
    %c0_18 = arith.constant 0 : index
    %24 = vector.load %arg7[%c0_17, %c0_18] : memref<1x128xf32, #tpu.memory_space<vmem>>, vector<1x128xf32>
    %25 = vector.broadcast %24 : vector<1x128xf32> to vector<16x128xf32>
    %26 = arith.addf %23, %25 : vector<16x128xf32>
    %cst_19 = arith.constant dense<0xFF800000> : vector<16xf32>
    %27 = vector.multi_reduction <maximumf>, %26, %cst_19 [1] : vector<16x128xf32> to vector<16xf32>
    %28 = vector.shape_cast %27 : vector<16xf32> to vector<16x1xf32>
    %29 = vector.broadcast %28 : vector<16x1xf32> to vector<16x128xf32>
    %30 = arith.subf %26, %29 : vector<16x128xf32>
    %31 = math.exp %30 : vector<16x128xf32>
    %cst_20 = arith.constant dense<0.000000e+00> : vector<16xf32>
    %32 = vector.multi_reduction <add>, %31, %cst_20 [1] : vector<16x128xf32> to vector<16xf32>
    %33 = vector.shape_cast %32 : vector<16xf32> to vector<16x1xf32>
    %34 = vector.extract_strided_slice %31 {offsets = [0, 0], sizes = [16, 16], strides = [1, 1]} : vector<16x128xf32> to vector<16x16xf32>
    %35 = vector.broadcast %33 : vector<16x1xf32> to vector<16x16xf32>
    %36 = arith.divf %34, %35 : vector<16x16xf32>
    %c0_21 = arith.constant 0 : index
    %c0_22 = arith.constant 0 : index
    %37 = vector.load %arg8[%c0_21, %c0_22] : memref<16x16xf32, #tpu.memory_space<vmem>>, vector<16x16xf32>
    tpu.vector_store %arg8[%c0_21, %c0_22], %36 {strides = array<i32>} : memref<16x16xf32, #tpu.memory_space<vmem>>, vector<16x16xf32>,
    return
  }
  func.func @transform_0(%arg0: i32) -> (i32, i32) {
    %c0_i32 = arith.constant 0 : i32
    %c0_i32_0 = arith.constant 0 : i32
    return %arg0, %c0_i32 : i32, i32
  }
  func.func @transform_1(%arg0: i32) -> (i32, i32) {
    %c0_i32 = arith.constant 0 : i32
    %c0_i32_0 = arith.constant 0 : i32
    %c0_i32_1 = arith.constant 0 : i32
    return %c0_i32, %c0_i32_0 : i32, i32
  }
  func.func @transform_2(%arg0: i32) -> (i32, i32) {
    %c0_i32 = arith.constant 0 : i32
    %c0_i32_0 = arith.constant 0 : i32
    %c0_i32_1 = arith.constant 0 : i32
    return %c0_i32, %c0_i32_0 : i32, i32
  }
  func.func @transform_3(%arg0: i32) -> (i32, i32) {
    %c0_i32 = arith.constant 0 : i32
    %c0_i32_0 = arith.constant 0 : i32
    %c0_i32_1 = arith.constant 0 : i32
    return %c0_i32, %c0_i32_0 : i32, i32
  }
  func.func @transform_4(%arg0: i32) -> (i32, i32) {
    %c0_i32 = arith.constant 0 : i32
    %c0_i32_0 = arith.constant 0 : i32
    %c0_i32_1 = arith.constant 0 : i32
    return %c0_i32, %c0_i32_0 : i32, i32
  }
  func.func @transform_5(%arg0: i32) -> (i32, i32) {
    %c0_i32 = arith.constant 0 : i32
    %c0_i32_0 = arith.constant 0 : i32
    %c0_i32_1 = arith.constant 0 : i32
    return %c0_i32, %c0_i32_0 : i32, i32
  }
  func.func @transform_6(%arg0: i32) -> (i32, i32) {
    %c0_i32 = arith.constant 0 : i32
    %c0_i32_0 = arith.constant 0 : i32
    %c0_i32_1 = arith.constant 0 : i32
    return %c0_i32, %c0_i32_0 : i32, i32
  }
  func.func @transform_7(%arg0: i32) -> (i32, i32) {
    %c0_i32 = arith.constant 0 : i32
    %c0_i32_0 = arith.constant 0 : i32
    return %arg0, %c0_i32 : i32, i32
  }
}

</mosaic_0001>

<bundles_post_ra>
// kernel: tpu_custom_call.1
= control target key start
LH: loop header
LB: loop body
LE: loop exit
PB: predicated region body
PF: predicated region fallthrough
CT: control target
= control target key end

     0   :  { %12 = vsyncpa [#allocation3], 0  ;;  %s872_s0 = inlined_call_operand.hbm [shape: f32[16,64], index: 0, kind: input, shape index: {}]   ;;  %s873_s1 = inlined_call_operand.hbm [shape: bf16[64,128], index: 1, kind: input, shape index: {}]   ;;  %s874_s2 = inlined_call_operand.vmem [shape: f32[1,128], index: 2, kind: input, shape index: {}]   ;;  %s875_s3 = inlined_call_operand.hbm [shape: bf16[128,128], index: 3, kind: input, shape index: {}]   ;;  %s876_s4 = inlined_call_operand.vmem [shape: f32[1,128], index: 4, kind: input, shape index: {}]   ;;  %s877_s5 = inlined_call_operand.hbm [shape: bf16[128,128], index: 5, kind: input, shape index: {}]   ;;  %s878_s6 = inlined_call_operand.vmem [shape: f32[1,128], index: 6, kind: input, shape index: {}]   ;;  %s879_s7 = inlined_call_operand.hbm [shape: f32[16,16], index: 7, kind: output, shape index: {}]  }
   0x1   :  { %13 = vsyncpa [#allocation6], 0 }
   0x2   :  { %14 = vsyncpa [#allocation9], 0 }
   0x3   :  { %15 = vsyncpa [#allocation4], 0  ;;  %s704_s24 = smov [#allocation5]   ;;  %s586_s28 = scalar_lea.hbm %s873_s1, 512 }
   0x4   :  { %s33_s25 = sshll.u32 %s704_s24, 4  ;;  %p587_p0 = scmp.ne.s32.totalorder %s873_s1, %s586_s28  ;;  %s34_s25 = int_to_ptr.vmem [resolvable:$true] %s33_s25 }
   0x5   :  { %p590_p1 = scmp.lt.u32.totalorder %s586_s28, %s873_s1 }
   0x7   :  { %p592_p2 = pnand %p590_p1, %p587_p0 }
   0x9   :  { %595 = shalt.err (!%p592_p2)
}
   0xa   :  { %s596_s10 = scalar_lea.vmem %s34_s25, 512  ;;  %p601_p4 = scmp.lt.s32.totalorder %s34_s25, %s34_s25 }
   0xb   :  { %p597_p3 = scmp.ne.s32.totalorder %s34_s25, %s596_s10  ;;  %p602_p5 = scmp.lt.s32.totalorder %s596_s10, %s596_s10 }
   0xd   :  { %p603_p6 = por %p602_p5, %p601_p4 }
   0xf   :  { %p604_p7 = pnand %p603_p6, %p597_p3 }
  0x11   :  { %607 = shalt.err (!%p604_p7)
}
  0x12   :  { %s705_s11 = smov 64   ;;  %s706_s12 = smov 4  }
  0x13   :  { %39 = dma.hbm_to_vmem [thread:$0]  %s873_s1, 512, %s34_s25, [#allocation6], %s705_s11, %s705_s11, %s706_s12  }
  0x14   :  { %s707_s15 = smov [#allocation2]   ;;  %s608_s19 = scalar_lea.hbm %s872_s0, 256 }
  0x15   :  { %s21_s16 = sshll.u32 %s707_s15, 4  ;;  %p609_p8 = scmp.ne.s32.totalorder %s872_s0, %s608_s19  ;;  %s22_s16 = int_to_ptr.vmem [resolvable:$true] %s21_s16 }
  0x16   :  { %p612_p9 = scmp.lt.u32.totalorder %s608_s19, %s872_s0 }
  0x18   :  { %p614_p10 = pnand %p612_p9, %p609_p8 }
  0x1a   :  { %617 = shalt.err (!%p614_p10)
}
  0x1b   :  { %s618_s24 = scalar_lea.vmem %s22_s16, 256  ;;  %p623_p12 = scmp.lt.s32.totalorder %s22_s16, %s22_s16 }
  0x1c   :  { %p619_p11 = scmp.ne.s32.totalorder %s22_s16, %s618_s24  ;;  %p624_p13 = scmp.lt.s32.totalorder %s618_s24, %s618_s24 }
  0x1e   :  { %p625_p0 = por %p624_p13, %p623_p12 }
  0x20   :  { %p626_p1 = pnand %p625_p0, %p619_p11 }
  0x22   :  { %629 = shalt.err (!%p626_p1)
}
  0x23   :  { %s708_s1 = smov 128   ;;  %s709_s25 = smov 8  }
  0x24   :  { %27 = dma.hbm_to_vmem [thread:$0]  %s872_s0, 256, %s22_s16, [#allocation3], %s708_s1, %s708_s1, %s709_s25  }
  0x25   :  { %s710_s28 = smov [#allocation7]   ;;  %s711_s30 = smov [#allocation8]  }
  0x26   :  { %s47_s29 = sshll.u32 %s710_s28, 4  ;;  %s61_s8 = sshll.u32 %s711_s30, 4  ;;  %s48_s29 = int_to_ptr.vmem [resolvable:$true] %s47_s29  ;;  %s785_s8 = int_to_ptr.vmem [resolvable:$true] %s61_s8 }
  0x27   :  { %s630_s13 = scalar_lea.hbm %s875_s3, 1024 }
  0x28   :  { %p631_p2 = scmp.ne.s32.totalorder %s875_s3, %s630_s13  ;;  %p634_p3 = scmp.lt.u32.totalorder %s630_s13, %s875_s3 }
  0x2a   :  { %p636_p4 = pnand %p634_p3, %p631_p2 }
  0x2c   :  { %639 = shalt.err (!%p636_p4)
}
  0x2d   :  { %s640_s0 = scalar_lea.vmem %s48_s29, 1024  ;;  %p645_p6 = scmp.lt.s32.totalorder %s48_s29, %s48_s29 }
  0x2e   :  { %p641_p5 = scmp.ne.s32.totalorder %s48_s29, %s640_s0  ;;  %p646_p7 = scmp.lt.s32.totalorder %s640_s0, %s640_s0 }
  0x30   :  { %p647_p8 = por %p646_p7, %p645_p6 }
  0x32   :  { %p648_p9 = pnand %p647_p8, %p641_p5 }
  0x34   :  { %651 = shalt.err (!%p648_p9)
}
  0x35   :  { %53 = dma.hbm_to_vmem [thread:$0]  %s875_s3, 1024, %s48_s29, [#allocation6], %s705_s11, %s705_s11, %s706_s12  }
  0x36   :  { %s652_s22 = scalar_lea.hbm %s877_s5, 1024 }
  0x37   :  { %p653_p10 = scmp.ne.s32.totalorder %s877_s5, %s652_s22  ;;  %p656_p11 = scmp.lt.u32.totalorder %s652_s22, %s877_s5 }
  0x39   :  { %p658_p12 = pnand %p656_p11, %p653_p10 }
  0x3b   :  { %661 = shalt.err (!%p658_p12)
}
  0x3c   :  { %s662_s28 = scalar_lea.vmem %s785_s8, 1024  ;;  %p667_p0 = scmp.lt.s32.totalorder %s785_s8, %s785_s8 }
  0x3d   :  { %p663_p13 = scmp.ne.s32.totalorder %s785_s8, %s662_s28  ;;  %p668_p1 = scmp.lt.s32.totalorder %s662_s28, %s662_s28 }
  0x3f   :  { %p669_p2 = por %p668_p1, %p667_p0 }
  0x41   :  { %p670_p3 = pnand %p669_p2, %p663_p13 }
  0x43   :  { %673 = shalt.err (!%p670_p3)
}
  0x44   :  { %67 = dma.hbm_to_vmem [thread:$0]  %s877_s5, 1024, %s785_s8, [#allocation9], %s705_s11, %s705_s11, %s706_s12  }
  0x45   :  { %696 = dma.done.wait [#allocation3], 256  }
  0x46   :  { %697 = vsyncadd [#allocation3], 4294967040 }
  0x47   :  { %698 = dma.done.wait [#allocation6], 1536  }
  0x48   :  { %699 = vsyncadd [#allocation6], 4294965760 }
  0x49   :  { %700 = dma.done.wait [#allocation9], 1024  }
  0x4a   :  { %701 = vsyncadd [#allocation9], 4294966272  ;;  %v712_v0 = vmov 0.0   ;;  %vm713_vm0 = vmmov 0   ;;  %v558_v1 = vld [vmem:[#allocation5] sm:$0xff]   ;;  %v559_v2 = vld [vmem:[#allocation5 + $0x8] sm:$0xff]  }
  0x4b   :  { %495 = vmatprep.subr.bf16.mxu0 %v712_v0  ;;  %503 = vmatprep.mubr.msk.bf16.mxu0 %vm713_vm0, %v712_v0  ;;  %v562_v3 = vld [vmem:[#allocation7] sm:$0xff]   ;;  %v560_v4 = vld [vmem:[#allocation5 + $0x10] sm:$0xff]   ;;  %v563_v5 = vld [vmem:[#allocation7 + $0x8] sm:$0xff]   ;;  %vm125_vm1 = vcmask 523264   ;;  %vm422_vm2 = vcmask 130048  }
  0x4c   :  { %507 = vmatprep.subr.bf16.mxu1 %v712_v0  ;;  %523 = vmatprep.mubr.msk.bf16.mxu1 %vm713_vm0, %v712_v0  ;;  %v561_v6 = vld [vmem:[#allocation5 + $0x18] sm:$0xff]   ;;  %v83_v7 = vld [vmem:[#allocation2] sm:$0xff]  ;;  %v566_v12 = vld [vmem:[#allocation7 + $0x20] sm:$0xff]  }
  0x4d   :  { %496 = vmatpush3.bf16.msra.mxu0 %v558_v1  ;;  %508 = vmatpush3.bf16.msra.mxu1 %v562_v3  ;;  %v84_v8 = vld [vmem:[#allocation2 + $0x8] sm:$0xff]  ;;  %v564_v9 = vld [vmem:[#allocation7 + $0x10] sm:$0xff]   ;;  %v567_v13 = vld [vmem:[#allocation7 + $0x28] sm:$0xff]  }
  0x4e   :  { %497 = vmatprep.subr.bf16.mxu0 %v712_v0  ;;  %509 = vmatprep.subr.bf16.mxu1 %v712_v0  ;;  %v85_v10 = vpack.c.bf16 %v84_v8, %v83_v7  ;;  %v565_v11 = vld [vmem:[#allocation7 + $0x18] sm:$0xff]   ;;  %v568_v14 = vld [vmem:[#allocation7 + $0x30] sm:$0xff]   ;;  %v570_v16 = vld [vmem:[#allocation8] sm:$0xff]  }
  0x4f   :  { %v569_v15 = vld [vmem:[#allocation7 + $0x38] sm:$0xff]   ;;  %v571_v17 = vld [vmem:[#allocation8 + $0x8] sm:$0xff]   ;;  %v572_v18 = vld [vmem:[#allocation8 + $0x10] sm:$0xff]  }
  0x50   :  { %v573_v19 = vld [vmem:[#allocation8 + $0x18] sm:$0xff]   ;;  %v574_v20 = vld [vmem:[#allocation8 + $0x20] sm:$0xff]   ;;  %v575_v21 = vld [vmem:[#allocation8 + $0x28] sm:$0xff]  }
  0x51   :  { %498 = vmatpush3.bf16.msra.mxu0 %v559_v2  ;;  %510 = vmatpush3.bf16.msra.mxu1 %v563_v5  ;;  %v444_v22 = vld [vmem:[%s874_s2] ss:$0 sm:$0xff]  ;;  %v577_v33 = vld [vmem:[#allocation8 + $0x38] sm:$0xff]  }
  0x52   :  { %499 = vmatprep.subr.bf16.mxu0 %v712_v0  ;;  %511 = vmatprep.subr.bf16.mxu1 %v712_v0  ;;  %v576_v32 = vld [vmem:[#allocation8 + $0x30] sm:$0xff]  }
  0x53   :  { %v452_v34 = vld [vmem:[%s876_s4] ss:$0 sm:$0xff]  ;;  %s714_s4 = smov [#allocation10]  }
  0x54   :  { %v463_v44 = vld [vmem:[%s878_s6] ss:$0 sm:$0xff]  ;;  %s430_s6 = sshll.u32 %s714_s4, 4  ;;  %s431_s6 = int_to_ptr.vmem [resolvable:$true] %s430_s6 }
  0x55   :  { %500 = vmatpush3.bf16.msra.mxu0 %v560_v4  ;;  %512 = vmatpush3.bf16.msra.mxu1 %v564_v9  ;;  %s674_s9 = scalar_lea.vmem %s431_s6, 256  ;;  %p679_p5 = scmp.lt.s32.totalorder %s431_s6, %s431_s6 }
  0x56   :  { %501 = vmatprep.subr.bf16.mxu0 %v712_v0  ;;  %513 = vmatprep.subr.bf16.mxu1 %v712_v0  ;;  %p675_p4 = scmp.ne.s32.totalorder %s431_s6, %s674_s9  ;;  %p680_p6 = scmp.lt.s32.totalorder %s674_s9, %s674_s9 }
  0x58   :  { %p681_p7 = por %p680_p6, %p679_p5 }
  0x59   :  { %502 = vmatpush3.bf16.msra.mxu0 %v561_v6  ;;  %514 = vmatpush3.bf16.msra.mxu1 %v565_v11 }
  0x5a   :  { %527 = vmatprep.subr.bf16.mxu0 %v712_v0  ;;  %515 = vmatprep.subr.bf16.mxu1 %v712_v0  ;;  %p682_p8 = pnand %p681_p7, %p675_p4 }
  0x5c   :  { %504 = vmatmul.mubr.msk.bf16.vlgmr.msra.gmra.mrb[0].mxu0 %vm125_vm1, %v85_v10 }
  0x5d   :  { %543 = vmatprep.mubr.msk.bf16.mxu0 %vm713_vm0, %v712_v0  ;;  %516 = vmatpush3.bf16.msra.mxu1 %v566_v12 }
  0x5e   :  { %517 = vmatprep.subr.bf16.mxu1 %v712_v0  ;;  %528 = vmatpush3.bf16.msra.mxu0 %v570_v16 }
  0x5f   :  { %529 = vmatprep.subr.bf16.mxu0 %v712_v0 }
  0x61   :  { %518 = vmatpush3.bf16.msra.mxu1 %v567_v13 }
  0x62   :  { %519 = vmatprep.subr.bf16.mxu1 %v712_v0  ;;  %530 = vmatpush3.bf16.msra.mxu0 %v571_v17 }
  0x63   :  { %531 = vmatprep.subr.bf16.mxu0 %v712_v0 }
  0x65   :  { %520 = vmatpush3.bf16.msra.mxu1 %v568_v14 }
  0x66   :  { %521 = vmatprep.subr.bf16.mxu1 %v712_v0  ;;  %532 = vmatpush3.bf16.msra.mxu0 %v572_v18 }
  0x67   :  { %533 = vmatprep.subr.bf16.mxu0 %v712_v0 }
  0x69   :  { %522 = vmatpush3.bf16.msra.mxu1 %v569_v15 }
  0x6a   :  { %534 = vmatpush3.bf16.msra.mxu0 %v573_v19 }
  0x6b   :  { %535 = vmatprep.subr.bf16.mxu0 %v712_v0 }
  0x6e   :  { %536 = vmatpush3.bf16.msra.mxu0 %v574_v20 }
  0x6f   :  { %537 = vmatprep.subr.bf16.mxu0 %v712_v0 }
  0x72   :  { %538 = vmatpush3.bf16.msra.mxu0 %v575_v21 }
  0x73   :  { %539 = vmatprep.subr.bf16.mxu0 %v712_v0 }
  0x76   :  { %540 = vmatpush3.bf16.msra.mxu0 %v576_v32 }
  0x77   :  { %541 = vmatprep.subr.bf16.mxu0 %v712_v0 }
  0x7a   :  { %542 = vmatpush3.bf16.msra.mxu0 %v577_v33 }
 0x12f   :  { %v163_v23 = vpop.f32.mrb[0].mxu0 }
 0x130   :  { %v164_v24 = vadd.f32 %v444_v22, %v163_v23  ;;  %v505_v25 = vpop.f32.mrb[1].mxu0 }
 0x131   :  { %v166_v26 = vpop.f32.mrb[2].mxu0 }
 0x132   :  { %v167_v27 = vadd.f32 %v444_v22, %v166_v26  ;;  %v506_v28 = vpop.f32.mrb[3].mxu0  ;;  %v450_v29 = vclamps-f32 %v164_v24, 1.0 }
 0x134   :  { %v451_v30 = vclamps-f32 %v167_v27, 1.0 }
 0x136   :  { %v174_v31 = vpack.c.bf16 %v451_v30, %v450_v29 }
 0x138   :  { %524 = vmatmul.mubr.bf16.vlgmr.msra.gmra.mrb[0].mxu1 %v174_v31 }
 0x20b   :  { %v280_v35 = vpop.f32.mrb[0].mxu1 }
 0x20c   :  { %v281_v36 = vadd.f32 %v452_v34, %v280_v35  ;;  %v525_v37 = vpop.f32.mrb[1].mxu1 }
 0x20d   :  { %v283_v38 = vpop.f32.mrb[2].mxu1 }
 0x20e   :  { %v284_v39 = vadd.f32 %v452_v34, %v283_v38  ;;  %v526_v40 = vpop.f32.mrb[3].mxu1  ;;  %v461_v41 = vclamps-f32 %v281_v36, 1.0 }
 0x210   :  { %v462_v42 = vclamps-f32 %v284_v39, 1.0 }
 0x212   :  { %v291_v43 = vpack.c.bf16 %v462_v42, %v461_v41 }
 0x214   :  { %544 = vmatmul.mubr.bf16.vlgmr.msra.gmra.mrb[4].mxu0 %v291_v43 }
 0x2e7   :  { %v397_v45 = vpop.f32.mrb[4].mxu0 }
 0x2e8   :  { %v398_v46 = vadd.f32 %v463_v44, %v397_v45  ;;  %v545_v47 = vpop.f32.mrb[5].mxu0 }
 0x2e9   :  { %v400_v48 = vpop.f32.mrb[6].mxu0 }
 0x2ea   :  { %404 = vmax.xlane.f32.xlu0 %v398_v46  ;;  %v546_v49 = vpop.f32.mrb[7].mxu0  ;;  %v401_v50 = vadd.f32 %v463_v44, %v400_v48 }
 0x2ee   :  { %406 = vmax.xlane.f32.xlu0 %v401_v50 }
 0x377   :  { %v405_v51 = vpop.xlane.xlu0 %404 }
 0x378   :  { %v408_v52 = vsub.f32 %v398_v46, %v405_v51 }
 0x37a   :  { %v410_v53 = vmul.f32 1.442695, %v408_v52 }
 0x37b   :  { %v407_v54 = vpop.xlane.xlu0 %406 }
 0x37c   :  { %578 = vpow2.f32 %v410_v53  ;;  %v409_v55 = vsub.f32 %v401_v50, %v407_v54 }
 0x37e   :  { %v412_v56 = vmul.f32 1.442695, %v409_v55 }
 0x380   :  { %580 = vpow2.f32 %v412_v56 }
 0x386   :  { %v579_v57 = vpop.eup %578 }
 0x387   :  { %414 = vadd.xlane.f32.xlu1 %v579_v57 }
 0x38a   :  { %v581_v58 = vpop.eup %580 }
 0x38b   :  { %416 = vadd.xlane.f32.xlu1 %v581_v58 }
 0x414   :  { %v415_v59 = vpop.xlane.xlu1 %414 }
 0x415   :  { %582 = vrcp.f32 %v415_v59 }
 0x418   :  { %v417_v60 = vpop.xlane.xlu1 %416 }
 0x419   :  { %584 = vrcp.f32 %v417_v60 }
 0x41f   :  { %v583_v61 = vpop.eup %582 }
 0x420   :  { %v419_v62 = vmul.f32 %v583_v61, %v579_v57 }
 0x422   :  { %423 = vst.msk [vmem:[#allocation10] sm:$0xff] %vm422_vm2, %v419_v62 }
 0x423   :  { %v585_v63 = vpop.eup %584 }
 0x424   :  { %v421_v0 = vmul.f32 %v585_v63, %v581_v58 }
 0x426   :  { %424 = vst.msk [vmem:[#allocation10 + $0x8] sm:$0xff] %vm422_vm2, %v421_v0 }
 0x427   :  { %685 = shalt.err (!%p682_p8)
}
 0x428   :  { %s686_s14 = scalar_lea.hbm %s879_s7, 256 }
 0x429   :  { %p687_p9 = scmp.ne.s32.totalorder %s879_s7, %s686_s14  ;;  %p690_p10 = scmp.lt.u32.totalorder %s686_s14, %s879_s7 }
 0x42b   :  { %p692_p11 = pnand %p690_p10, %p687_p9 }
 0x42d   :  { %695 = shalt.err (!%p692_p11)
}
 0x42e   :  { %436 = dma.vmem_to_hbm [thread:$0]  %s431_s6, 256, %s879_s7, [#allocation4], %s708_s1, %s708_s1, %s709_s25  }
 0x42f   :  { %702 = dma.done.wait [#allocation4], 256  }
 0x430   :  { %703 = vsyncadd [#allocation4], 4294967040 }
 0x431   :  { %440 = vsyncpa [#allocation3], 1 }
 0x432   :  { %441 = vsyncpa [#allocation6], 1 }
 0x433   :  { %442 = vsyncpa [#allocation9], 1 }
 0x434   :  { %443 = vsyncpa [#allocation4], 1 }

</bundles_post_ra>
